<compile_context>
chip_gen: v5e
topology: v5e:2x2
jax: 0.10.0
libtpu: 0.0.40
codegen_flags: <defaults>
</compile_context>

<pallas_src>
import jax
import jax.numpy as jnp
from jax.experimental import pallas as pl
from jax.experimental.pallas import tpu as pltpu

NETWORK_CHANNELS = 64
NUM_HIDDEN_LAYERS = 4
OUT_CHANNELS = 1
DEFAULT_TM = 8192          # original rows per grid step
MIN_ROWS_FOR_PALLAS = 1024 # below this, XLA fusion beats kernel launch overhead


def _round_up(x, m):
    return ((x + m - 1) // m) * m


def _default_fold():
    """R=2 on v5e (128-wide MXU), R=4 on v6e/v7x (256-wide MXU)."""
    try:
        kind = jax.devices()[0].device_kind.lower()
        if "v5" in kind:
            return 2
    except Exception:
        pass
    return 4


# --------------------------------------------------------------------------
# Kernel
# --------------------------------------------------------------------------
def discriminator_kernel(x_ref, wh_ref, bh_ref, wo_ref, bo_ref, o_ref):
    """One folded (TMf, R*C) row-tile of the full forward pass.

    x_ref : (TMf, R*C)        bf16  folded activation tile
    wh_ref: (L, R*C, R*C)     bf16  block-diagonal hidden weights (in, out)
    bh_ref: (L, 1, R*C)       f32   hidden biases, tiled R times
    wo_ref: (R*C, R)          bf16  block final-layer weight
    bo_ref: (1, 1)            f32   final-layer bias
    o_ref : (TMf, R)          f32   folded output tile
    """
    h = x_ref[...]  # bf16

    for l in range(NUM_HIDDEN_LAYERS):
        y = jnp.dot(h, wh_ref[l], preferred_element_type=jnp.float32)
        y = y + bh_ref[l]                 # (1, R*C) broadcasts over rows
        y = jnp.maximum(y, 0.2 * y)       # LeakyReLU(0.2) as a single vmax
        h = y.astype(jnp.bfloat16)

    out = jnp.dot(h, wo_ref[...], preferred_element_type=jnp.float32)
    o_ref[...] = out + bo_ref[...]


# --------------------------------------------------------------------------
# Parameters (PyTorch-style uniform(+-1/sqrt(fan_in)) init)
# --------------------------------------------------------------------------
def init_params(key, channels=NETWORK_CHANNELS):
    """Weights stored transposed vs. torch.nn.Linear, i.e. (in, out)."""
    keys = jax.random.split(key, 2 * (NUM_HIDDEN_LAYERS + 1))
    bound = 1.0 / float(jnp.sqrt(channels))

    wh = jnp.stack([
        jax.random.uniform(keys[2 * l], (channels, channels), jnp.float32,
                           -bound, bound)
        for l in range(NUM_HIDDEN_LAYERS)
    ])                                                     # (4, 64, 64)
    bh = jnp.stack([
        jax.random.uniform(keys[2 * l + 1], (1, channels), jnp.float32,
                           -bound, bound)
        for l in range(NUM_HIDDEN_LAYERS)
    ])                                                     # (4, 1, 64)
    wo = jax.random.uniform(keys[-2], (1, channels), jnp.float32,
                            -bound, bound)                 # (1, 64)
    bo = jax.random.uniform(keys[-1], (1, 1), jnp.float32,
                            -bound, bound)                 # (1, 1)
    return {"wh": wh, "bh": bh, "wo": wo, "bo": bo}


def _pack_block_diag(params, r):
    """Replicate weights into block-diagonal (row-folded) form, bf16."""
    wh = params["wh"]                     # (L, C, C)
    c = wh.shape[-1]
    eye = jnp.eye(r, dtype=wh.dtype)

    # wh_blk[l, s*C+i, t*C+j] = wh[l, i, j] if s == t else 0
    wh_blk = jnp.einsum("st,lij->lsitj", eye, wh).reshape(
        NUM_HIDDEN_LAYERS, r * c, r * c).astype(jnp.bfloat16)

    bh_blk = jnp.tile(params["bh"], (1, 1, r)).astype(jnp.float32)   # (L, 1, R*C)

    # wo_blk[s*C+j, t] = wo[0, j] if s == t else 0
    wo_blk = jnp.einsum("st,j->sjt", jnp.eye(r, dtype=wh.dtype),
                        params["wo"][0]).reshape(r * c, r).astype(jnp.bfloat16)

    bo = params["bo"].astype(jnp.float32)                            # (1, 1)
    return wh_blk, bh_blk, wo_blk, bo


# --------------------------------------------------------------------------
# Wrapper
# --------------------------------------------------------------------------
def discriminator_forward(x, params, tm=DEFAULT_TM, fold=None,
                          min_rows_for_pallas=MIN_ROWS_FOR_PALLAS):
    """x: (..., 64) float -> (..., 1) float32."""
    lead_shape = x.shape[:-1]
    c = params["wh"].shape[-1]

    x2d = x.reshape(-1, c)
    m = x2d.shape[0]

    # Tiny inputs: launch/DMA fixed cost dominates -> pure-JAX path.
    if m < min_rows_for_pallas:
        return discriminator_ref(x2d, params).reshape(*lead_shape, OUT_CHANNELS)

    r = fold if fold is not None else _default_fold()
    row_quant = 8 * r                     # folded sublane alignment

    # Tile size (in original rows): multiple of 8*R, no larger than needed.
    tm = max(row_quant, min(tm, _round_up(m, row_quant)))
    tm = _round_up(tm, row_quant)
    # Keep >= 2 grid steps so v7x's two TensorCores both get work.
    if m >= 2 * row_quant:
        tm = min(tm, _round_up(pl.cdiv(m, 2), row_quant))

    m_pad = pl.cdiv(m, tm) * tm
    x2d = x2d.astype(jnp.bfloat16)        # stream activations as bf16
    if m_pad != m:
        x2d = jnp.pad(x2d, ((0, m_pad - m), (0, 0)))

    # Fold R rows into the channel dim -> lane-dense (M/R, R*C) activations.
    x_folded = x2d.reshape(m_pad // r, r * c)
    tm_f = tm // r

    wh_blk, bh_blk, wo_blk, bo = _pack_block_diag(params, r)

    grid = (m_pad // tm,)

    out_folded = pl.pallas_call(
        discriminator_kernel,
        out_shape=jax.ShapeDtypeStruct((m_pad // r, r), jnp.float32),
        grid=grid,
        in_specs=[
            # Activations: row-tiled, double-buffered over the grid.
            pl.BlockSpec((tm_f, r * c), lambda i: (i, 0)),
            # Parameters: constant index_map -> fetched once, VMEM-resident.
            pl.BlockSpec(wh_blk.shape, lambda i: (0, 0, 0)),
            pl.BlockSpec(bh_blk.shape, lambda i: (0, 0, 0)),
            pl.BlockSpec(wo_blk.shape, lambda i: (0, 0)),
            pl.BlockSpec(bo.shape, lambda i: (0, 0)),
        ],
        out_specs=pl.BlockSpec((tm_f, r), lambda i: (i, 0)),
        compiler_params=pltpu.CompilerParams(
            dimension_semantics=("parallel",)),
    )(x_folded, wh_blk, bh_blk, wo_blk, bo)

    out2d = out_folded.reshape(m_pad, OUT_CHANNELS)[:m]
    return out2d.reshape(*lead_shape, OUT_CHANNELS)


# --------------------------------------------------------------------------
# References
# --------------------------------------------------------------------------
def discriminator_ref(x, params):
    """Pure-JAX f32 reference."""
    h = x.astype(jnp.float32)
    for l in range(NUM_HIDDEN_LAYERS):
        h = jnp.dot(h, params["wh"][l]) + params["bh"][l]
        h = jnp.maximum(h, 0.2 * h)
    return jnp.dot(h, params["wo"].T) + params["bo"]


def discriminator_ref_bf16(x, params):
    """Reference that emulates the kernel's bf16-operand / f32-accum math."""
    h = x.astype(jnp.bfloat16)
    for l in range(NUM_HIDDEN_LAYERS):
        y = jnp.dot(h, params["wh"][l].astype(jnp.bfloat16),
                    preferred_element_type=jnp.float32)
        y = y + params["bh"][l]
        y = jnp.maximum(y, 0.2 * y)
        h = y.astype(jnp.bfloat16)
    return jnp.dot(h, params["wo"].T.astype(jnp.bfloat16),
                   preferred_element_type=jnp.float32) + params["bo"]


if __name__ == "__main__":
    key = jax.random.PRNGKey(0)
    k_x, k_xb, k_p = jax.random.split(key, 3)
    params = init_params(k_p)

    # Small example consistent with the module: (batch=2, seq=8, channels=64).
    # Goes through the small-input fast path.
    x_small = jax.random.normal(k_x, (2, 8, NETWORK_CHANNELS), jnp.float32)
    out_small = jax.block_until_ready(discriminator_forward(x_small, params))
    ref_small = discriminator_ref(x_small, params)
    assert out_small.shape == (2, 8, OUT_CHANNELS), out_small.shape
    assert jnp.allclose(out_small, ref_small, atol=5e-2, rtol=5e-2), \
        "small-path mismatch vs reference"

    # Same small input forced through the Pallas kernel (exercises padding).
    out_small_k = jax.block_until_ready(
        discriminator_forward(x_small, params, min_rows_for_pallas=0))
    assert out_small_k.shape == (2, 8, OUT_CHANNELS), out_small_k.shape
    assert jnp.allclose(out_small_k, ref_small, atol=5e-2, rtol=5e-2), \
        "small kernel mismatch vs f32 reference"

    # Larger batch: multi-step grid, row folding, lane-dense tiles.
    x_big = jax.random.normal(k_xb, (4096, NETWORK_CHANNELS), jnp.float32)
    out_big = jax.block_until_ready(
        discriminator_forward(x_big, params, tm=1024, min_rows_for_pallas=0))
    ref_big_f32 = discriminator_ref(x_big, params)
    ref_big_bf16 = discriminator_ref_bf16(x_big, params)
    assert out_big.shape == (4096, OUT_CHANNELS), out_big.shape
    # Loose check vs f32 reference (bf16 rounding compounds over 5 matmuls)...
    assert jnp.allclose(out_big, ref_big_f32, atol=5e-2, rtol=5e-2), \
        "kernel mismatch vs f32 reference"
    # ...and a tight check vs a bf16-emulated reference (catches layout bugs).
    assert jnp.allclose(out_big, ref_big_bf16, atol=1e-2, rtol=1e-2), \
        "kernel mismatch vs bf16-emulated reference"

    print("KERNEL_OK")
</pallas_src>

<mosaic_0001>
module attributes {stable_mosaic.version = 11 : i64} {
  func.func @discriminator_kernel(%arg0: i32, %arg1: memref<8x256xbf16, #tpu.memory_space<vmem>>, %arg2: memref<4x256x256xbf16, #tpu.memory_space<vmem>>, %arg3: memref<4x1x256xf32, #tpu.memory_space<vmem>>, %arg4: memref<256x4xbf16, #tpu.memory_space<vmem>>, %arg5: memref<1x1xf32, #tpu.memory_space<vmem>>, %arg6: memref<8x4xf32, #tpu.memory_space<vmem>>) attributes {dimension_semantics = [#tpu.dimension_semantics<parallel>], iteration_bounds = array<i64: 1>, scalar_prefetch = 0 : i64, scratch_operands = 0 : i64, tpu.core_type = #tpu.core_type<tc>, window_params = [{transform_indices = @transform_0, window_bounds = array<i64: 8, 256>}, {pipeline_mode = #tpu.pipeline_mode<synchronous>, transform_indices = @transform_1, window_bounds = array<i64: 4, 256, 256>}, {pipeline_mode = #tpu.pipeline_mode<synchronous>, transform_indices = @transform_2, window_bounds = array<i64: 4, 1, 256>}, {pipeline_mode = #tpu.pipeline_mode<synchronous>, transform_indices = @transform_3, window_bounds = array<i64: 256, 4>}, {pipeline_mode = #tpu.pipeline_mode<synchronous>, transform_indices = @transform_4, window_bounds = array<i64: 1, 1>}, {transform_indices = @transform_5, window_bounds = array<i64: 8, 4>}]} {
    %c0 = arith.constant 0 : index
    %c0_0 = arith.constant 0 : index
    %0 = vector.load %arg1[%c0, %c0_0] : memref<8x256xbf16, #tpu.memory_space<vmem>>, vector<8x256xbf16>
    %c0_1 = arith.constant 0 : index
    %c0_2 = arith.constant 0 : index
    %c0_3 = arith.constant 0 : index
    %1 = vector.load %arg2[%c0_1, %c0_2, %c0_3] : memref<4x256x256xbf16, #tpu.memory_space<vmem>>, vector<1x256x256xbf16>
    %2 = vector.shape_cast %1 : vector<1x256x256xbf16> to vector<256x256xbf16>
    %cst = arith.constant dense<0.000000e+00> : vector<8x256xf32>
    %3 = tpu.matmul %0, %2, %cst {dimension_numbers = #tpu.dot_dimension_numbers<[1], [0], [0], [1], [0, 0, 1, 1], [], []>} : vector<8x256xbf16>, vector<256x256xbf16>, vector<8x256xf32> -> vector<8x256xf32>
    %c0_4 = arith.constant 0 : index
    %c0_5 = arith.constant 0 : index
    %c0_6 = arith.constant 0 : index
    %4 = vector.load %arg3[%c0_4, %c0_5, %c0_6] : memref<4x1x256xf32, #tpu.memory_space<vmem>>, vector<1x1x256xf32>
    %5 = vector.shape_cast %4 : vector<1x1x256xf32> to vector<1x256xf32>
    %6 = vector.broadcast %5 : vector<1x256xf32> to vector<8x256xf32>
    %7 = arith.addf %3, %6 : vector<8x256xf32>
    %cst_7 = arith.constant 2.000000e-01 : f32
    %8 = vector.broadcast %cst_7 : f32 to vector<8x256xf32>
    %9 = arith.mulf %8, %7 : vector<8x256xf32>
    %10 = arith.maximumf %7, %9 : vector<8x256xf32>
    %11 = arith.truncf %10 : vector<8x256xf32> to vector<8x256xbf16>
    %c1 = arith.constant 1 : index
    %c0_8 = arith.constant 0 : index
    %c0_9 = arith.constant 0 : index
    %12 = vector.load %arg2[%c1, %c0_8, %c0_9] : memref<4x256x256xbf16, #tpu.memory_space<vmem>>, vector<1x256x256xbf16>
    %13 = vector.shape_cast %12 : vector<1x256x256xbf16> to vector<256x256xbf16>
    %cst_10 = arith.constant dense<0.000000e+00> : vector<8x256xf32>
    %14 = tpu.matmul %11, %13, %cst_10 {dimension_numbers = #tpu.dot_dimension_numbers<[1], [0], [0], [1], [0, 0, 1, 1], [], []>} : vector<8x256xbf16>, vector<256x256xbf16>, vector<8x256xf32> -> vector<8x256xf32>
    %c1_11 = arith.constant 1 : index
    %c0_12 = arith.constant 0 : index
    %c0_13 = arith.constant 0 : index
    %15 = vector.load %arg3[%c1_11, %c0_12, %c0_13] : memref<4x1x256xf32, #tpu.memory_space<vmem>>, vector<1x1x256xf32>
    %16 = vector.shape_cast %15 : vector<1x1x256xf32> to vector<1x256xf32>
    %17 = vector.broadcast %16 : vector<1x256xf32> to vector<8x256xf32>
    %18 = arith.addf %14, %17 : vector<8x256xf32>
    %cst_14 = arith.constant 2.000000e-01 : f32
    %19 = vector.broadcast %cst_14 : f32 to vector<8x256xf32>
    %20 = arith.mulf %19, %18 : vector<8x256xf32>
    %21 = arith.maximumf %18, %20 : vector<8x256xf32>
    %22 = arith.truncf %21 : vector<8x256xf32> to vector<8x256xbf16>
    %c2 = arith.constant 2 : index
    %c0_15 = arith.constant 0 : index
    %c0_16 = arith.constant 0 : index
    %23 = vector.load %arg2[%c2, %c0_15, %c0_16] : memref<4x256x256xbf16, #tpu.memory_space<vmem>>, vector<1x256x256xbf16>
    %24 = vector.shape_cast %23 : vector<1x256x256xbf16> to vector<256x256xbf16>
    %cst_17 = arith.constant dense<0.000000e+00> : vector<8x256xf32>
    %25 = tpu.matmul %22, %24, %cst_17 {dimension_numbers = #tpu.dot_dimension_numbers<[1], [0], [0], [1], [0, 0, 1, 1], [], []>} : vector<8x256xbf16>, vector<256x256xbf16>, vector<8x256xf32> -> vector<8x256xf32>
    %c2_18 = arith.constant 2 : index
    %c0_19 = arith.constant 0 : index
    %c0_20 = arith.constant 0 : index
    %26 = vector.load %arg3[%c2_18, %c0_19, %c0_20] : memref<4x1x256xf32, #tpu.memory_space<vmem>>, vector<1x1x256xf32>
    %27 = vector.shape_cast %26 : vector<1x1x256xf32> to vector<1x256xf32>
    %28 = vector.broadcast %27 : vector<1x256xf32> to vector<8x256xf32>
    %29 = arith.addf %25, %28 : vector<8x256xf32>
    %cst_21 = arith.constant 2.000000e-01 : f32
    %30 = vector.broadcast %cst_21 : f32 to vector<8x256xf32>
    %31 = arith.mulf %30, %29 : vector<8x256xf32>
    %32 = arith.maximumf %29, %31 : vector<8x256xf32>
    %33 = arith.truncf %32 : vector<8x256xf32> to vector<8x256xbf16>
    %c3 = arith.constant 3 : index
    %c0_22 = arith.constant 0 : index
    %c0_23 = arith.constant 0 : index
    %34 = vector.load %arg2[%c3, %c0_22, %c0_23] : memref<4x256x256xbf16, #tpu.memory_space<vmem>>, vector<1x256x256xbf16>
    %35 = vector.shape_cast %34 : vector<1x256x256xbf16> to vector<256x256xbf16>
    %cst_24 = arith.constant dense<0.000000e+00> : vector<8x256xf32>
    %36 = tpu.matmul %33, %35, %cst_24 {dimension_numbers = #tpu.dot_dimension_numbers<[1], [0], [0], [1], [0, 0, 1, 1], [], []>} : vector<8x256xbf16>, vector<256x256xbf16>, vector<8x256xf32> -> vector<8x256xf32>
    %c3_25 = arith.constant 3 : index
    %c0_26 = arith.constant 0 : index
    %c0_27 = arith.constant 0 : index
    %37 = vector.load %arg3[%c3_25, %c0_26, %c0_27] : memref<4x1x256xf32, #tpu.memory_space<vmem>>, vector<1x1x256xf32>
    %38 = vector.shape_cast %37 : vector<1x1x256xf32> to vector<1x256xf32>
    %39 = vector.broadcast %38 : vector<1x256xf32> to vector<8x256xf32>
    %40 = arith.addf %36, %39 : vector<8x256xf32>
    %cst_28 = arith.constant 2.000000e-01 : f32
    %41 = vector.broadcast %cst_28 : f32 to vector<8x256xf32>
    %42 = arith.mulf %41, %40 : vector<8x256xf32>
    %43 = arith.maximumf %40, %42 : vector<8x256xf32>
    %44 = arith.truncf %43 : vector<8x256xf32> to vector<8x256xbf16>
    %c0_29 = arith.constant 0 : index
    %c0_30 = arith.constant 0 : index
    %45 = vector.load %arg4[%c0_29, %c0_30] : memref<256x4xbf16, #tpu.memory_space<vmem>>, vector<256x4xbf16>
    %cst_31 = arith.constant dense<0.000000e+00> : vector<8x4xf32>
    %46 = tpu.matmul %44, %45, %cst_31 {dimension_numbers = #tpu.dot_dimension_numbers<[1], [0], [0], [1], [0, 0, 1, 1], [], []>} : vector<8x256xbf16>, vector<256x4xbf16>, vector<8x4xf32> -> vector<8x4xf32>
    %c0_32 = arith.constant 0 : index
    %c0_33 = arith.constant 0 : index
    %47 = vector.load %arg5[%c0_32, %c0_33] : memref<1x1xf32, #tpu.memory_space<vmem>>, vector<1x1xf32>
    %48 = vector.broadcast %47 : vector<1x1xf32> to vector<8x4xf32>
    %49 = arith.addf %46, %48 : vector<8x4xf32>
    %c0_34 = arith.constant 0 : index
    %c0_35 = arith.constant 0 : index
    %50 = vector.load %arg6[%c0_34, %c0_35] : memref<8x4xf32, #tpu.memory_space<vmem>>, vector<8x4xf32>
    tpu.vector_store %arg6[%c0_34, %c0_35], %49 {strides = array<i32>} : memref<8x4xf32, #tpu.memory_space<vmem>>, vector<8x4xf32>,
    return
  }
  func.func @transform_0(%arg0: i32) -> (i32, i32) {
    %c0_i32 = arith.constant 0 : i32
    %c0_i32_0 = arith.constant 0 : i32
    return %arg0, %c0_i32 : i32, i32
  }
  func.func @transform_1(%arg0: i32) -> (i32, i32, i32) {
    %c0_i32 = arith.constant 0 : i32
    %c0_i32_0 = arith.constant 0 : i32
    %c0_i32_1 = arith.constant 0 : i32
    %c0_i32_2 = arith.constant 0 : i32
    return %c0_i32, %c0_i32_0, %c0_i32_1 : i32, i32, i32
  }
  func.func @transform_2(%arg0: i32) -> (i32, i32, i32) {
    %c0_i32 = arith.constant 0 : i32
    %c0_i32_0 = arith.constant 0 : i32
    %c0_i32_1 = arith.constant 0 : i32
    %c0_i32_2 = arith.constant 0 : i32
    return %c0_i32, %c0_i32_0, %c0_i32_1 : i32, i32, i32
  }
  func.func @transform_3(%arg0: i32) -> (i32, i32) {
    %c0_i32 = arith.constant 0 : i32
    %c0_i32_0 = arith.constant 0 : i32
    %c0_i32_1 = arith.constant 0 : i32
    return %c0_i32, %c0_i32_0 : i32, i32
  }
  func.func @transform_4(%arg0: i32) -> (i32, i32) {
    %c0_i32 = arith.constant 0 : i32
    %c0_i32_0 = arith.constant 0 : i32
    %c0_i32_1 = arith.constant 0 : i32
    return %c0_i32, %c0_i32_0 : i32, i32
  }
  func.func @transform_5(%arg0: i32) -> (i32, i32) {
    %c0_i32 = arith.constant 0 : i32
    %c0_i32_0 = arith.constant 0 : i32
    return %arg0, %c0_i32 : i32, i32
  }
}

</mosaic_0001>

<bundles_post_ra>
// kernel: tpu_custom_call.1
= control target key start
LH: loop header
LB: loop body
LE: loop exit
PB: predicated region body
PF: predicated region fallthrough
CT: control target
= control target key end

     0   :  { %s2105_s0 = inlined_call_operand.vmem [shape: bf16[8,256], index: 0, kind: input, shape index: {}]   ;;  %s2106_s1 = inlined_call_operand.hbm [shape: bf16[4,256,256], index: 1, kind: input, shape index: {}]   ;;  %s2107_s2 = inlined_call_operand.vmem [shape: f32[4,1,256], index: 2, kind: input, shape index: {}]   ;;  %s2108_s3 = inlined_call_operand.vmem [shape: bf16[256,4], index: 3, kind: input, shape index: {}]   ;;  %s2109_s4 = inlined_call_operand.<no memory space> [shape: f32[1,1], index: 4, kind: input, shape index: {}]   ;;  %s2110_s5 = inlined_call_operand.vmem [shape: f32[8,4], index: 5, kind: output, shape index: {}]  }
   0x1   :  { %v10_v0 = vstv %s2109_s4 }
   0x2   :  { %11 = vst [vmem:[#allocation2] sm:$0x1] %v10_v0 }
   0x3   :  { %12 = vsyncpa [#allocation4], 0  ;;  %s19_s22 = sshll.u32 %s2106_s1, 4  ;;  %s1999_s23 = smov [#allocation3]   ;;  %s20_s22 = int_to_ptr.hbm [resolvable:$true] %s19_s22 }
   0x4   :  { %s21_s24 = sshll.u32 %s1999_s23, 4  ;;  %s2000_s25 = smov 128   ;;  %s22_s24 = int_to_ptr.vmem [resolvable:$true] %s21_s24 }
   0x5   :  { %s2001_s26 = smov 8  }
   0x6   :  { %27 = dma.hbm_to_vmem [thread:$0]  %s20_s22, 16384, %s22_s24, [#allocation4], %s2000_s25, %s2000_s25, %s2001_s26  }
   0x7   :  { %1997 = dma.done.wait [#allocation4], 16384  }
   0x8   :  { %1998 = vsyncadd [#allocation4], 4294950912  ;;  %v1302_v1 = vld [vmem:[#allocation3 + $0x70] sm:$0xf]  ;;  %v1838_v2 = vld [vmem:[#allocation3 + $0x74] sm:$0xf0] }
   0x9   :  { %v1366_v3 = vld [vmem:[#allocation3 + $0xf0] sm:$0xf]  ;;  %v1303_v4 = vor.u32 %v1838_v2, %v1302_v1  ;;  %v1854_v5 = vld [vmem:[#allocation3 + $0xf4] sm:$0xf0]  ;;  %v1837_v6 = vld [vmem:[#allocation3 + $0x74] sm:$0xf] }
   0xa   :  { %v1304_v7 = vld [vmem:[#allocation3 + $0x78] sm:$0xf0]  ;;  %v1367_v8 = vor.u32 %v1854_v5, %v1366_v3  ;;  %v1853_v10 = vld [vmem:[#allocation3 + $0xf4] sm:$0xf]  ;;  %v1294_v12 = vld [vmem:[#allocation3 + $0x60] sm:$0xf] }
   0xb   :  { %v1307_v9 = vor.u32 %v1837_v6, %v1304_v7  ;;  %v1368_v11 = vld [vmem:[#allocation3 + $0xf8] sm:$0xf0]  ;;  %244 = vmatpush.bf16.msra.mxu0 %v1303_v4  ;;  %v1836_v14 = vld [vmem:[#allocation3 + $0x64] sm:$0xf0]  ;;  %v1358_v15 = vld [vmem:[#allocation3 + $0xe0] sm:$0xf] }
   0xc   :  { %v1371_v13 = vor.u32 %v1853_v10, %v1368_v11  ;;  %v1852_v16 = vld [vmem:[#allocation3 + $0xe4] sm:$0xf0]  ;;  %257 = vmatpush.bf16.msra.mxu1 %v1367_v8  ;;  %v1295_v17 = vor.u32 %v1836_v14, %v1294_v12  ;;  %v1835_v19 = vld [vmem:[#allocation3 + $0x64] sm:$0xf]  ;;  %v1296_v20 = vld [vmem:[#allocation3 + $0x68] sm:$0xf0] }
   0xd   :  { %270 = vmatpush.bf16.msra.mxu2 %v1307_v9  ;;  %v1359_v18 = vor.u32 %v1852_v16, %v1358_v15  ;;  %v1851_v21 = vld [vmem:[#allocation3 + $0xe4] sm:$0xf]  ;;  %v1299_v22 = vor.u32 %v1835_v19, %v1296_v20  ;;  %v1360_v23 = vld [vmem:[#allocation3 + $0xe8] sm:$0xf0]  ;;  %v1286_v24 = vld [vmem:[#allocation3 + $0x50] sm:$0xf] }
   0xe   :  { %283 = vmatpush.bf16.msra.mxu3 %v1371_v13  ;;  %v1834_v25 = vld [vmem:[#allocation3 + $0x54] sm:$0xf0]  ;;  %v1363_v26 = vor.u32 %v1851_v21, %v1360_v23  ;;  %v1350_v27 = vld [vmem:[#allocation3 + $0xd0] sm:$0xf]  ;;  %v1833_v29 = vld [vmem:[#allocation3 + $0x54] sm:$0xf] }
   0xf   :  { %v1850_v28 = vld [vmem:[#allocation3 + $0xd4] sm:$0xf0]  ;;  %245 = vmatpush.bf16.msra.mxu0 %v1295_v17  ;;  %v1287_v30 = vor.u32 %v1834_v25, %v1286_v24  ;;  %v1288_v31 = vld [vmem:[#allocation3 + $0x58] sm:$0xf0]  ;;  %v1849_v32 = vld [vmem:[#allocation3 + $0xd4] sm:$0xf] }
  0x10   :  { %v1352_v33 = vld [vmem:[#allocation3 + $0xd8] sm:$0xf0]  ;;  %258 = vmatpush.bf16.msra.mxu1 %v1359_v18  ;;  %v1351_v34 = vor.u32 %v1850_v28, %v1350_v27  ;;  %v1291_v35 = vor.u32 %v1833_v29, %v1288_v31  ;;  %v1278_v36 = vld [vmem:[#allocation3 + $0x40] sm:$0xf]  ;;  %v1832_v37 = vld [vmem:[#allocation3 + $0x44] sm:$0xf0] }
  0x11   :  { %271 = vmatpush.bf16.msra.mxu2 %v1299_v22  ;;  %v1342_v38 = vld [vmem:[#allocation3 + $0xc0] sm:$0xf]  ;;  %v1355_v39 = vor.u32 %v1849_v32, %v1352_v33  ;;  %v1848_v40 = vld [vmem:[#allocation3 + $0xc4] sm:$0xf0]  ;;  %v1831_v41 = vld [vmem:[#allocation3 + $0x44] sm:$0xf]  ;;  %v1279_v45 = vor.u32 %v1832_v37, %v1278_v36 }
  0x12   :  { %284 = vmatpush.bf16.msra.mxu3 %v1363_v26  ;;  %v1280_v42 = vld [vmem:[#allocation3 + $0x48] sm:$0xf0]  ;;  %v1847_v43 = vld [vmem:[#allocation3 + $0xc4] sm:$0xf]  ;;  %v1343_v46 = vor.u32 %v1848_v40, %v1342_v38  ;;  %v1270_v48 = vld [vmem:[#allocation3 + $0x30] sm:$0xf] }
  0x13   :  { %v1344_v44 = vld [vmem:[#allocation3 + $0xc8] sm:$0xf0]  ;;  %246 = vmatpush.bf16.msra.mxu0 %v1287_v30  ;;  %v1283_v47 = vor.u32 %v1831_v41, %v1280_v42  ;;  %v1830_v49 = vld [vmem:[#allocation3 + $0x34] sm:$0xf0]  ;;  %v1334_v50 = vld [vmem:[#allocation3 + $0xb0] sm:$0xf] }
  0x14   :  { %259 = vmatpush.bf16.msra.mxu1 %v1351_v34  ;;  %v1347_v51 = vor.u32 %v1847_v43, %v1344_v44  ;;  %v1846_v52 = vld [vmem:[#allocation3 + $0xb4] sm:$0xf0]  ;;  %v1829_v53 = vld [vmem:[#allocation3 + $0x34] sm:$0xf]  ;;  %v1272_v54 = vld [vmem:[#allocation3 + $0x38] sm:$0xf0]  ;;  %v1271_v57 = vor.u32 %v1830_v49, %v1270_v48 }
  0x15   :  { %272 = vmatpush.bf16.msra.mxu2 %v1291_v35  ;;  %v1845_v55 = vld [vmem:[#allocation3 + $0xb4] sm:$0xf]  ;;  %v1336_v56 = vld [vmem:[#allocation3 + $0xb8] sm:$0xf0]  ;;  %v1335_v58 = vor.u32 %v1846_v52, %v1334_v50  ;;  %v1275_v59 = vor.u32 %v1829_v53, %v1272_v54  ;;  %v1262_v60 = vld [vmem:[#allocation3 + $0x20] sm:$0xf] }
  0x16   :  { %285 = vmatpush.bf16.msra.mxu3 %v1355_v39  ;;  %v1828_v61 = vld [vmem:[#allocation3 + $0x24] sm:$0xf0]  ;;  %v1326_v62 = vld [vmem:[#allocation3 + $0xa0] sm:$0xf]  ;;  %v1339_v63 = vor.u32 %v1845_v55, %v1336_v56  ;;  %v1827_v1 = vld [vmem:[#allocation3 + $0x24] sm:$0xf] }
  0x17   :  { %247 = vmatpush.bf16.msra.mxu0 %v1279_v45  ;;  %v1844_v0 = vld [vmem:[#allocation3 + $0xa4] sm:$0xf0]  ;;  %v1264_v2 = vld [vmem:[#allocation3 + $0x28] sm:$0xf0]  ;;  %v1843_v3 = vld [vmem:[#allocation3 + $0xa4] sm:$0xf]  ;;  %v1263_v5 = vor.u32 %v1828_v61, %v1262_v60 }
  0x18   :  { %260 = vmatpush.bf16.msra.mxu1 %v1343_v46  ;;  %v1328_v4 = vld [vmem:[#allocation3 + $0xa8] sm:$0xf0]  ;;  %v1327_v6 = vor.u32 %v1844_v0, %v1326_v62  ;;  %v1267_v7 = vor.u32 %v1827_v1, %v1264_v2  ;;  %v1254_v8 = vld [vmem:[#allocation3 + $0x10] sm:$0xf]  ;;  %v1826_v9 = vld [vmem:[#allocation3 + $0x14] sm:$0xf0] }
  0x19   :  { %273 = vmatpush.bf16.msra.mxu2 %v1283_v47  ;;  %v1318_v10 = vld [vmem:[#allocation3 + $0x90] sm:$0xf]  ;;  %v1331_v11 = vor.u32 %v1843_v3, %v1328_v4  ;;  %v1842_v12 = vld [vmem:[#allocation3 + $0x94] sm:$0xf0]  ;;  %v1825_v13 = vld [vmem:[#allocation3 + $0x14] sm:$0xf]  ;;  %v1255_v17 = vor.u32 %v1826_v9, %v1254_v8 }
  0x1a   :  { %286 = vmatpush.bf16.msra.mxu3 %v1347_v51  ;;  %v1256_v14 = vld [vmem:[#allocation3 + $0x18] sm:$0xf0]  ;;  %v1841_v15 = vld [vmem:[#allocation3 + $0x94] sm:$0xf]  ;;  %v1246_v18 = vld [vmem:[#allocation3] sm:$0xf]  ;;  %v1319_v20 = vor.u32 %v1842_v12, %v1318_v10 }
  0x1b   :  { %248 = vmatpush.bf16.msra.mxu0 %v1271_v57  ;;  %v1320_v16 = vld [vmem:[#allocation3 + $0x98] sm:$0xf0]  ;;  %v1259_v21 = vor.u32 %v1825_v13, %v1256_v14  ;;  %v1824_v22 = vld [vmem:[#allocation3 + $0x4] sm:$0xf0]  ;;  %v1310_v23 = vld [vmem:[#allocation3 + $0x80] sm:$0xf] }
  0x1c   :  { %261 = vmatpush.bf16.msra.mxu1 %v1335_v58  ;;  %v38_v19 = vld [vmem:[%s2105_s0] sm:$0xff]  ;;  %v1840_v24 = vld [vmem:[#allocation3 + $0x84] sm:$0xf0]  ;;  %v1323_v25 = vor.u32 %v1841_v15, %v1320_v16  ;;  %v1248_v27 = vld [vmem:[#allocation3 + $0x8] sm:$0xf0]  ;;  %v1247_v33 = vor.u32 %v1824_v22, %v1246_v18  ;;  %vm1237_vm0 = vcmask 31744  }
  0x1d   :  { %274 = vmatpush.bf16.msra.mxu2 %v1275_v59  ;;  %v1823_v26 = vld [vmem:[#allocation3 + $0x4] sm:$0xf]  ;;  %v1312_v29 = vld [vmem:[#allocation3 + $0x88] sm:$0xf0]  ;;  %v78_v30 = vunpack.c.l.b16 %v38_v19  ;;  %v1431_v31 = vld [vmem:[#allocation3 + $0x170] sm:$0xf]  ;;  %v79_v34 = vunpack.c.h.b16 %v38_v19  ;;  %v1311_v37 = vor.u32 %v1840_v24, %v1310_v23 }
  0x1e   :  { %287 = vmatpush.bf16.msra.mxu3 %v1339_v63  ;;  %v1839_v28 = vld [vmem:[#allocation3 + $0x84] sm:$0xf]  ;;  %v1870_v32 = vld [vmem:[#allocation3 + $0x174] sm:$0xf0]  ;;  %v1869_v35 = vld [vmem:[#allocation3 + $0x174] sm:$0xf]  ;;  %v1251_v38 = vor.u32 %v1823_v26, %v1248_v27 }
  0x1f   :  { %249 = vmatpush.bf16.msra.mxu0 %v1263_v5  ;;  %v1433_v36 = vld [vmem:[#allocation3 + $0x178] sm:$0xf0]  ;;  %v1315_v39 = vor.u32 %v1839_v28, %v1312_v29  ;;  %v1432_v40 = vor.u32 %v1870_v32, %v1431_v31  ;;  %v1423_v41 = vld [vmem:[#allocation3 + $0x160] sm:$0xf]  ;;  %v1495_v42 = vld [vmem:[#allocation3 + $0x1f0] sm:$0xf]  ;;  %v80_v44 = vpack.c.b16 %v78_v30, %v78_v30  ;;  %v81_v49 = vpack.c.b16 %v79_v34, %v79_v34 }
  0x20   :  { %262 = vmatpush.bf16.msra.mxu1 %v1327_v6  ;;  %v1886_v43 = vld [vmem:[#allocation3 + $0x1f4] sm:$0xf0]  ;;  %v1436_v45 = vor.u32 %v1869_v35, %v1433_v36  ;;  %v1868_v46 = vld [vmem:[#allocation3 + $0x164] sm:$0xf0]  ;;  %v1885_v47 = vld [vmem:[#allocation3 + $0x1f4] sm:$0xf] }
  0x21   :  { %275 = vmatpush.bf16.msra.mxu2 %v1267_v7  ;;  %v1497_v48 = vld [vmem:[#allocation3 + $0x1f8] sm:$0xf0]  ;;  %v1867_v50 = vld [vmem:[#allocation3 + $0x164] sm:$0xf]  ;;  %v1425_v51 = vld [vmem:[#allocation3 + $0x168] sm:$0xf0]  ;;  %v1496_v52 = vor.u32 %v1886_v43, %v1495_v42  ;;  %v1424_v54 = vor.u32 %v1868_v46, %v1423_v41 }
  0x22   :  { %288 = vmatpush.bf16.msra.mxu3 %v1331_v11  ;;  %v1415_v53 = vld [vmem:[#allocation3 + $0x150] sm:$0xf]  ;;  %v1500_v55 = vor.u32 %v1885_v47, %v1497_v48  ;;  %v1866_v56 = vld [vmem:[#allocation3 + $0x154] sm:$0xf0]  ;;  %v1487_v57 = vld [vmem:[#allocation3 + $0x1e0] sm:$0xf]  ;;  %v1428_v59 = vor.u32 %v1867_v50, %v1425_v51 }
  0x23   :  { %250 = vmatpush.bf16.msra.mxu0 %v1255_v17  ;;  %v1884_v58 = vld [vmem:[#allocation3 + $0x1e4] sm:$0xf0]  ;;  %v1883_v60 = vld [vmem:[#allocation3 + $0x1e4] sm:$0xf]  ;;  %v1489_v61 = vld [vmem:[#allocation3 + $0x1e8] sm:$0xf0]  ;;  %v1416_v1 = vor.u32 %v1866_v56, %v1415_v53 }
  0x24   :  { %263 = vmatpush.bf16.msra.mxu1 %v1319_v20  ;;  %v1865_v62 = vld [vmem:[#allocation3 + $0x154] sm:$0xf]  ;;  %v1417_v63 = vld [vmem:[#allocation3 + $0x158] sm:$0xf0]  ;;  %v1488_v0 = vor.u32 %v1884_v58, %v1487_v57  ;;  %v1492_v2 = vor.u32 %v1883_v60, %v1489_v61  ;;  %v1407_v3 = vld [vmem:[#allocation3 + $0x140] sm:$0xf] }
  0x25   :  { %276 = vmatpush.bf16.msra.mxu2 %v1259_v21  ;;  %v1479_v4 = vld [vmem:[#allocation3 + $0x1d0] sm:$0xf]  ;;  %v1882_v5 = vld [vmem:[#allocation3 + $0x1d4] sm:$0xf0]  ;;  %v1420_v6 = vor.u32 %v1865_v62, %v1417_v63  ;;  %v1864_v7 = vld [vmem:[#allocation3 + $0x144] sm:$0xf0] }
  0x26   :  { %289 = vmatpush.bf16.msra.mxu3 %v1323_v25  ;;  %v1881_v8 = vld [vmem:[#allocation3 + $0x1d4] sm:$0xf]  ;;  %v1481_v9 = vld [vmem:[#allocation3 + $0x1d8] sm:$0xf0]  ;;  %v1863_v10 = vld [vmem:[#allocation3 + $0x144] sm:$0xf]  ;;  %v1480_v12 = vor.u32 %v1882_v5, %v1479_v4  ;;  %v1408_v13 = vor.u32 %v1864_v7, %v1407_v3 }
  0x27   :  { %251 = vmatpush.bf16.msra.mxu0 %v1247_v33  ;;  %v1409_v11 = vld [vmem:[#allocation3 + $0x148] sm:$0xf0]  ;;  %v1484_v14 = vor.u32 %v1881_v8, %v1481_v9  ;;  %v1399_v15 = vld [vmem:[#allocation3 + $0x130] sm:$0xf]  ;;  %v1471_v16 = vld [vmem:[#allocation3 + $0x1c0] sm:$0xf] }
  0x28   :  { %264 = vmatpush.bf16.msra.mxu1 %v1311_v37  ;;  %v1880_v17 = vld [vmem:[#allocation3 + $0x1c4] sm:$0xf0]  ;;  %v1412_v18 = vor.u32 %v1863_v10, %v1409_v11  ;;  %v1862_v19 = vld [vmem:[#allocation3 + $0x134] sm:$0xf0]  ;;  %v1879_v20 = vld [vmem:[#allocation3 + $0x1c4] sm:$0xf] }
  0x29   :  { %277 = vmatpush.bf16.msra.mxu2 %v1251_v38  ;;  %v1473_v21 = vld [vmem:[#allocation3 + $0x1c8] sm:$0xf0]  ;;  %v1861_v22 = vld [vmem:[#allocation3 + $0x134] sm:$0xf]  ;;  %v1401_v23 = vld [vmem:[#allocation3 + $0x138] sm:$0xf0]  ;;  %v1472_v24 = vor.u32 %v1880_v17, %v1471_v16  ;;  %v1400_v25 = vor.u32 %v1862_v19, %v1399_v15 }
  0x2a   :  { %290 = vmatpush.bf16.msra.mxu3 %v1315_v39  ;;  %252 = vmatmul.bf16.vlgmr.msra.gmra.mxu0 %v80_v44  ;;  %v1476_v26 = vor.u32 %v1879_v20, %v1473_v21  ;;  %v1404_v27 = vor.u32 %v1861_v22, %v1401_v23  ;;  %v1391_v28 = vld [vmem:[#allocation3 + $0x120] sm:$0xf]  ;;  %v1860_v29 = vld [vmem:[#allocation3 + $0x124] sm:$0xf0]  ;;  %v1859_v30 = vld [vmem:[#allocation3 + $0x124] sm:$0xf] }
  0x2b   :  { %502 = vmatpush.bf16.msrb.mxu0 %v1432_v40  ;;  %265 = vmatmul.bf16.vlgmr.msra.gmra.mxu1 %v81_v49  ;;  %v1392_v31 = vor.u32 %v1860_v29, %v1391_v28  ;;  %v1393_v32 = vld [vmem:[#allocation3 + $0x128] sm:$0xf0]  ;;  %v1463_v34 = vld [vmem:[#allocation3 + $0x1b0] sm:$0xf]  ;;  %v1878_v35 = vld [vmem:[#allocation3 + $0x1b4] sm:$0xf0] }
  0x2c   :  { %278 = vmatmul.bf16.vlgmr.msra.gmra.mxu2 %v80_v44  ;;  %515 = vmatpush.bf16.msrb.mxu1 %v1496_v52  ;;  %v1396_v33 = vor.u32 %v1859_v30, %v1393_v32  ;;  %v1877_v36 = vld [vmem:[#allocation3 + $0x1b4] sm:$0xf]  ;;  %v1464_v37 = vor.u32 %v1878_v35, %v1463_v34  ;;  %v1465_v38 = vld [vmem:[#allocation3 + $0x1b8] sm:$0xf0]  ;;  %v1383_v40 = vld [vmem:[#allocation3 + $0x110] sm:$0xf] }
  0x2d   :  { %528 = vmatpush.bf16.msrb.mxu2 %v1436_v45  ;;  %291 = vmatmul.bf16.vlgmr.msra.gmra.mxu3 %v81_v49  ;;  %v1468_v39 = vor.u32 %v1877_v36, %v1465_v38  ;;  %v1858_v41 = vld [vmem:[#allocation3 + $0x114] sm:$0xf0]  ;;  %v1857_v42 = vld [vmem:[#allocation3 + $0x114] sm:$0xf]  ;;  %v1385_v44 = vld [vmem:[#allocation3 + $0x118] sm:$0xf0] }
  0x2e   :  { %541 = vmatpush.bf16.msrb.mxu3 %v1500_v55  ;;  %v1384_v43 = vor.u32 %v1858_v41, %v1383_v40  ;;  %v1388_v45 = vor.u32 %v1857_v42, %v1385_v44  ;;  %v1455_v46 = vld [vmem:[#allocation3 + $0x1a0] sm:$0xf]  ;;  %v1876_v47 = vld [vmem:[#allocation3 + $0x1a4] sm:$0xf0]  ;;  %v1875_v48 = vld [vmem:[#allocation3 + $0x1a4] sm:$0xf] }
  0x2f   :  { %503 = vmatpush.bf16.msrb.mxu0 %v1424_v54  ;;  %v1456_v49 = vor.u32 %v1876_v47, %v1455_v46  ;;  %v1457_v50 = vld [vmem:[#allocation3 + $0x1a8] sm:$0xf0]  ;;  %v1375_v52 = vld [vmem:[#allocation3 + $0x100] sm:$0xf]  ;;  %v1856_v53 = vld [vmem:[#allocation3 + $0x104] sm:$0xf0] }
  0x30   :  { %516 = vmatpush.bf16.msrb.mxu1 %v1488_v0  ;;  %v1460_v51 = vor.u32 %v1875_v48, %v1457_v50  ;;  %v1376_v54 = vor.u32 %v1856_v53, %v1375_v52  ;;  %v1855_v55 = vld [vmem:[#allocation3 + $0x104] sm:$0xf]  ;;  %v1377_v56 = vld [vmem:[#allocation3 + $0x108] sm:$0xf0]  ;;  %v1447_v58 = vld [vmem:[#allocation3 + $0x190] sm:$0xf] }
  0x31   :  { %529 = vmatpush.bf16.msrb.mxu2 %v1428_v59  ;;  %v1380_v57 = vor.u32 %v1855_v55, %v1377_v56  ;;  %v1874_v59 = vld [vmem:[#allocation3 + $0x194] sm:$0xf0]  ;;  %v1873_v60 = vld [vmem:[#allocation3 + $0x194] sm:$0xf]  ;;  %v1449_v62 = vld [vmem:[#allocation3 + $0x198] sm:$0xf0] }
  0x32   :  { %542 = vmatpush.bf16.msrb.mxu3 %v1492_v2  ;;  %v1448_v61 = vor.u32 %v1874_v59, %v1447_v58  ;;  %v1452_v63 = vor.u32 %v1873_v60, %v1449_v62  ;;  %v1439_v0 = vld [vmem:[#allocation3 + $0x180] sm:$0xf]  ;;  %v1871_v2 = vld [vmem:[#allocation3 + $0x184] sm:$0xf]  ;;  %v1441_v4 = vld [vmem:[#allocation3 + $0x188] sm:$0xf0] }
  0x33   :  { %504 = vmatpush.bf16.msrb.mxu0 %v1416_v1  ;;  %v1872_v1 = vld [vmem:[#allocation3 + $0x184] sm:$0xf0]  ;;  %v1444_v5 = vor.u32 %v1871_v2, %v1441_v4  ;;  %v1902_v7 = vld [vmem:[#allocation3 + $0x274] sm:$0xf0]  ;;  %v1901_v8 = vld [vmem:[#allocation3 + $0x274] sm:$0xf] }
  0x34   :  { %517 = vmatpush.bf16.msrb.mxu1 %v1480_v12  ;;  %v1440_v3 = vor.u32 %v1872_v1, %v1439_v0  ;;  %v1562_v10 = vld [vmem:[#allocation3 + $0x278] sm:$0xf0]  ;;  %v1552_v11 = vld [vmem:[#allocation3 + $0x260] sm:$0xf]  ;;  %v1900_v12 = vld [vmem:[#allocation3 + $0x264] sm:$0xf0] }
  0x35   :  { %530 = vmatpush.bf16.msrb.mxu2 %v1420_v6  ;;  %v1560_v6 = vld [vmem:[#allocation3 + $0x270] sm:$0xf]  ;;  %v1554_v15 = vld [vmem:[#allocation3 + $0x268] sm:$0xf0]  ;;  %v1553_v17 = vor.u32 %v1900_v12, %v1552_v11  ;;  %v1917_v19 = vld [vmem:[#allocation3 + $0x2f4] sm:$0xf] }
  0x36   :  { %543 = vmatpush.bf16.msrb.mxu3 %v1484_v14  ;;  %v1561_v9 = vor.u32 %v1902_v7, %v1560_v6  ;;  %v1899_v14 = vld [vmem:[#allocation3 + $0x264] sm:$0xf]  ;;  %v1624_v16 = vld [vmem:[#allocation3 + $0x2f0] sm:$0xf]  ;;  %v1626_v20 = vld [vmem:[#allocation3 + $0x2f8] sm:$0xf0] }
  0x37   :  { %505 = vmatpush.bf16.msrb.mxu0 %v1408_v13  ;;  %v1565_v13 = vor.u32 %v1901_v8, %v1562_v10  ;;  %v1557_v21 = vor.u32 %v1899_v14, %v1554_v15  ;;  %v1629_v23 = vor.u32 %v1917_v19, %v1626_v20  ;;  %v1616_v28 = vld [vmem:[#allocation3 + $0x2e0] sm:$0xf]  ;;  %v1916_v29 = vld [vmem:[#allocation3 + $0x2e4] sm:$0xf0]  ;;  %v1618_v32 = vld [vmem:[#allocation3 + $0x2e8] sm:$0xf0] }
  0x38   :  { %518 = vmatpush.bf16.msrb.mxu1 %v1472_v24  ;;  %v1544_v24 = vld [vmem:[#allocation3 + $0x250] sm:$0xf]  ;;  %v1617_v30 = vor.u32 %v1916_v29, %v1616_v28  ;;  %v1536_v36 = vld [vmem:[#allocation3 + $0x240] sm:$0xf]  ;;  %v1914_v40 = vld [vmem:[#allocation3 + $0x2d4] sm:$0xf0] }
  0x39   :  { %531 = vmatpush.bf16.msrb.mxu2 %v1412_v18  ;;  %v1918_v18 = vld [vmem:[#allocation3 + $0x2f4] sm:$0xf0]  ;;  %v1913_v41 = vld [vmem:[#allocation3 + $0x2d4] sm:$0xf]  ;;  %v1895_v42 = vld [vmem:[#allocation3 + $0x244] sm:$0xf] }
  0x3a   :  { %544 = vmatpush.bf16.msrb.mxu3 %v1476_v26  ;;  %v1625_v22 = vor.u32 %v1918_v18, %v1624_v16  ;;  %v1897_v26 = vld [vmem:[#allocation3 + $0x254] sm:$0xf]  ;;  %v1610_v44 = vld [vmem:[#allocation3 + $0x2d8] sm:$0xf0]  ;;  %v1894_v6 = vld [vmem:[#allocation3 + $0x234] sm:$0xf0] }
  0x3b   :  { %506 = vmatpush.bf16.msrb.mxu0 %v1400_v25  ;;  %v1898_v25 = vld [vmem:[#allocation3 + $0x254] sm:$0xf0]  ;;  %v1613_v46 = vor.u32 %v1913_v41, %v1610_v44  ;;  %v1893_v7 = vld [vmem:[#allocation3 + $0x234] sm:$0xf]  ;;  %v1600_v11 = vld [vmem:[#allocation3 + $0x2c0] sm:$0xf] }
  0x3c   :  { %519 = vmatpush.bf16.msrb.mxu1 %v1464_v37  ;;  %v1545_v34 = vor.u32 %v1898_v25, %v1544_v24  ;;  %v1896_v37 = vld [vmem:[#allocation3 + $0x244] sm:$0xf0]  ;;  %v1602_v15 = vld [vmem:[#allocation3 + $0x2c8] sm:$0xf0]  ;;  %v1520_v16 = vld [vmem:[#allocation3 + $0x220] sm:$0xf] }
  0x3d   :  { %532 = vmatpush.bf16.msrb.mxu2 %v1404_v27  ;;  %v1546_v27 = vld [vmem:[#allocation3 + $0x258] sm:$0xf0]  ;;  %v1537_v48 = vor.u32 %v1896_v37, %v1536_v36  ;;  %v1912_v12 = vld [vmem:[#allocation3 + $0x2c4] sm:$0xf0]  ;;  %v1891_v20 = vld [vmem:[#allocation3 + $0x224] sm:$0xf] }
  0x3e   :  { %545 = vmatpush.bf16.msrb.mxu3 %v1468_v39  ;;  %v1549_v38 = vor.u32 %v1897_v26, %v1546_v27  ;;  %v1608_v39 = vld [vmem:[#allocation3 + $0x2d0] sm:$0xf]  ;;  %v1601_v14 = vor.u32 %v1912_v12, %v1600_v11  ;;  %v1910_v24 = vld [vmem:[#allocation3 + $0x2b4] sm:$0xf0]  ;;  %v1909_v25 = vld [vmem:[#allocation3 + $0x2b4] sm:$0xf] }
  0x3f   :  { %507 = vmatpush.bf16.msrb.mxu0 %v1392_v31  ;;  %v1915_v31 = vld [vmem:[#allocation3 + $0x2e4] sm:$0xf]  ;;  %v1594_v27 = vld [vmem:[#allocation3 + $0x2b8] sm:$0xf0]  ;;  %v1512_v29 = vld [vmem:[#allocation3 + $0x210] sm:$0xf] }
  0x40   :  { %520 = vmatpush.bf16.msrb.mxu1 %v1456_v49  ;;  %v1621_v35 = vor.u32 %v1915_v31, %v1618_v32  ;;  %v1597_v28 = vor.u32 %v1909_v25, %v1594_v27  ;;  %v1889_v31 = vld [vmem:[#allocation3 + $0x214] sm:$0xf]  ;;  %v1908_v36 = vld [vmem:[#allocation3 + $0x2a4] sm:$0xf0]  ;;  %v1504_v41 = vld [vmem:[#allocation3 + $0x200] sm:$0xf] }
  0x41   :  { %533 = vmatpush.bf16.msrb.mxu2 %v1396_v33  ;;  %v71_v33 = vld [vmem:[%s2107_s2] sm:$0x3] }
  0x42   :  { %546 = vmatpush.bf16.msrb.mxu3 %v1460_v51  ;;  %v73_v47 = vperm.slane %v71_v33, 0  ;;  %v1665_v25 = vld [vmem:[#allocation3 + $0x340] sm:$0xf] }
  0x43   :  { %508 = vmatpush.bf16.msrb.mxu0 %v1384_v43  ;;  %v1538_v43 = vld [vmem:[#allocation3 + $0x248] sm:$0xf0] }
  0x44   :  { %521 = vmatpush.bf16.msrb.mxu1 %v1448_v61  ;;  %v1541_v49 = vor.u32 %v1895_v42, %v1538_v43  ;;  %v1888_v42 = vld [vmem:[#allocation3 + $0x204] sm:$0xf0]  ;;  %v1887_v43 = vld [vmem:[#allocation3 + $0x204] sm:$0xf] }
  0x45   :  { %534 = vmatpush.bf16.msrb.mxu2 %v1388_v45  ;;  %v1609_v45 = vor.u32 %v1914_v40, %v1608_v39  ;;  %v1586_v39 = vld [vmem:[#allocation3 + $0x2a8] sm:$0xf0]  ;;  %v1505_v44 = vor.u32 %v1888_v42, %v1504_v41 }
  0x46   :  { %547 = vmatpush.bf16.msrb.mxu3 %v1452_v63 }
  0x47   :  { %509 = vmatpush.bf16.msrb.mxu0 %v1376_v54  ;;  %v74_v54 = vperm.slane %v71_v33, 1  ;;  %v1514_v33 = vld [vmem:[#allocation3 + $0x218] sm:$0xf0] }
  0x48   :  { %522 = vmatpush.bf16.msrb.mxu1 %v1440_v3 }
  0x49   :  { %535 = vmatpush.bf16.msrb.mxu2 %v1380_v57 }
  0x4a   :  { %548 = vmatpush.bf16.msrb.mxu3 %v1444_v5  ;;  %v1528_v5 = vld [vmem:[#allocation3 + $0x230] sm:$0xf] }
  0x4b   :  { %760 = vmatpush.bf16.msra.mxu0 %v1561_v9  ;;  %v1529_v8 = vor.u32 %v1894_v6, %v1528_v5  ;;  %v1530_v9 = vld [vmem:[#allocation3 + $0x238] sm:$0xf0]  ;;  %v1753_v5 = vld [vmem:[#allocation3 + $0x3f0] sm:$0xf] }
  0x4c   :  { %773 = vmatpush.bf16.msra.mxu1 %v1625_v22  ;;  %v1533_v10 = vor.u32 %v1893_v7, %v1530_v9  ;;  %v1950_v7 = vld [vmem:[#allocation3 + $0x3f4] sm:$0xf0]  ;;  %v1755_v9 = vld [vmem:[#allocation3 + $0x3f8] sm:$0xf0] }
  0x4d   :  { %786 = vmatpush.bf16.msra.mxu2 %v1565_v13  ;;  %v1911_v13 = vld [vmem:[#allocation3 + $0x2c4] sm:$0xf]  ;;  %v1754_v11 = vor.u32 %v1950_v7, %v1753_v5  ;;  %v1649_v5 = vld [vmem:[#allocation3 + $0x320] sm:$0xf] }
  0x4e   :  { %799 = vmatpush.bf16.msra.mxu3 %v1629_v23  ;;  %v1605_v18 = vor.u32 %v1911_v13, %v1602_v15  ;;  %v1592_v23 = vld [vmem:[#allocation3 + $0x2b0] sm:$0xf]  ;;  %v1929_v15 = vld [vmem:[#allocation3 + $0x354] sm:$0xf] }
  0x4f   :  { %761 = vmatpush.bf16.msra.mxu0 %v1553_v17  ;;  %v1892_v17 = vld [vmem:[#allocation3 + $0x224] sm:$0xf0]  ;;  %v1593_v26 = vor.u32 %v1910_v24, %v1592_v23  ;;  %v1673_v13 = vld [vmem:[#allocation3 + $0x350] sm:$0xf] }
  0x50   :  { %774 = vmatpush.bf16.msra.mxu1 %v1617_v30  ;;  %v1521_v19 = vor.u32 %v1892_v17, %v1520_v16  ;;  %v1890_v30 = vld [vmem:[#allocation3 + $0x214] sm:$0xf0]  ;;  %v1675_v16 = vld [vmem:[#allocation3 + $0x358] sm:$0xf0]  ;;  %v1745_v17 = vld [vmem:[#allocation3 + $0x3e0] sm:$0xf] }
  0x51   :  { %787 = vmatpush.bf16.msra.mxu2 %v1557_v21  ;;  %v1522_v21 = vld [vmem:[#allocation3 + $0x228] sm:$0xf0]  ;;  %v1513_v32 = vor.u32 %v1890_v30, %v1512_v29  ;;  %v1678_v27 = vor.u32 %v1929_v15, %v1675_v16  ;;  %v1946_v29 = vld [vmem:[#allocation3 + $0x3d4] sm:$0xf0]  ;;  %v1945_v30 = vld [vmem:[#allocation3 + $0x3d4] sm:$0xf] }
  0x52   :  { %800 = vmatpush.bf16.msra.mxu3 %v1621_v35  ;;  %v1525_v22 = vor.u32 %v1891_v20, %v1522_v21  ;;  %v1584_v35 = vld [vmem:[#allocation3 + $0x2a0] sm:$0xf]  ;;  %v1947_v20 = vld [vmem:[#allocation3 + $0x3e4] sm:$0xf]  ;;  %v1747_v21 = vld [vmem:[#allocation3 + $0x3e8] sm:$0xf0] }
  0x53   :  { %762 = vmatpush.bf16.msra.mxu0 %v1545_v34  ;;  %v1517_v34 = vor.u32 %v1889_v31, %v1514_v33  ;;  %v1585_v37 = vor.u32 %v1908_v36, %v1584_v35  ;;  %v1750_v24 = vor.u32 %v1947_v20, %v1747_v21  ;;  %v1927_v31 = vld [vmem:[#allocation3 + $0x344] sm:$0xf]  ;;  %v1739_v33 = vld [vmem:[#allocation3 + $0x3d8] sm:$0xf0]  ;;  %v1921_v21 = vld [vmem:[#allocation3 + $0x314] sm:$0xf] }
  0x54   :  { %775 = vmatpush.bf16.msra.mxu1 %v1609_v45  ;;  %v1506_v45 = vld [vmem:[#allocation3 + $0x208] sm:$0xf0]  ;;  %v1742_v36 = vor.u32 %v1945_v30, %v1739_v33  ;;  %v1723_v16 = vld [vmem:[#allocation3 + $0x3b8] sm:$0xf0]  ;;  %v1633_v30 = vld [vmem:[#allocation3 + $0x300] sm:$0xf] }
  0x55   :  { %788 = vmatpush.bf16.msra.mxu2 %v1549_v38  ;;  %v1907_v38 = vld [vmem:[#allocation3 + $0x2a4] sm:$0xf] }
  0x56   :  { %801 = vmatpush.bf16.msra.mxu3 %v1613_v46  ;;  %v1589_v40 = vor.u32 %v1907_v38, %v1586_v39  ;;  %v1509_v46 = vor.u32 %v1887_v43, %v1506_v45 }
  0x57   :  { %763 = vmatpush.bf16.msra.mxu0 %v1537_v48  ;;  %v1906_v48 = vld [vmem:[#allocation3 + $0x294] sm:$0xf0] }
  0x58   :  { %776 = vmatpush.bf16.msra.mxu1 %v1601_v14  ;;  %v1930_v14 = vld [vmem:[#allocation3 + $0x354] sm:$0xf0] }
  0x59   :  { %789 = vmatpush.bf16.msra.mxu2 %v1541_v49  ;;  %v1905_v49 = vld [vmem:[#allocation3 + $0x294] sm:$0xf]  ;;  %v1674_v23 = vor.u32 %v1930_v14, %v1673_v13  ;;  %v1942_v13 = vld [vmem:[#allocation3 + $0x3b4] sm:$0xf0] }
  0x5a   :  { %802 = vmatpush.bf16.msra.mxu3 %v1605_v18  ;;  %v1948_v18 = vld [vmem:[#allocation3 + $0x3e4] sm:$0xf0]  ;;  %v1941_v14 = vld [vmem:[#allocation3 + $0x3b4] sm:$0xf] }
  0x5b   :  { %764 = vmatpush.bf16.msra.mxu0 %v1529_v8  ;;  %v1949_v8 = vld [vmem:[#allocation3 + $0x3f4] sm:$0xf] }
  0x5c   :  { %777 = vmatpush.bf16.msra.mxu1 %v1593_v26  ;;  %v1758_v12 = vor.u32 %v1949_v8, %v1755_v9  ;;  %v1928_v26 = vld [vmem:[#allocation3 + $0x344] sm:$0xf0]  ;;  %v1923_v9 = vld [vmem:[#allocation3 + $0x324] sm:$0xf] }
  0x5d   :  { %790 = vmatpush.bf16.msra.mxu2 %v1533_v10 }
  0x5e   :  { %803 = vmatpush.bf16.msra.mxu3 %v1597_v28  ;;  %v1737_v28 = vld [vmem:[#allocation3 + $0x3d0] sm:$0xf] }
  0x5f   :  { %765 = vmatpush.bf16.msra.mxu0 %v1521_v19  ;;  %v1746_v19 = vor.u32 %v1948_v18, %v1745_v17  ;;  %v1738_v35 = vor.u32 %v1946_v29, %v1737_v28  ;;  %v1726_v17 = vor.u32 %v1941_v14, %v1723_v16  ;;  %v1641_v18 = vld [vmem:[#allocation3 + $0x310] sm:$0xf]  ;;  %v1715_v28 = vld [vmem:[#allocation3 + $0x3a8] sm:$0xf0] }
  0x60   :  { %778 = vmatpush.bf16.msra.mxu1 %v1585_v37  ;;  %v1666_v37 = vor.u32 %v1928_v26, %v1665_v25  ;;  %v1940_v25 = vld [vmem:[#allocation3 + $0x3a4] sm:$0xf0]  ;;  %v1939_v26 = vld [vmem:[#allocation3 + $0x3a4] sm:$0xf]  ;;  %v1953_v14 = vld [vmem:[%s2108_s3 + $0x10] sm:$0xff] }
  0x61   :  { %791 = vmatpush.bf16.msra.mxu2 %v1525_v22  ;;  %v1372_v22 = vld [vmem:[%s2107_s2 + $0x2] sm:$0x3]  ;;  %v1718_v29 = vor.u32 %v1939_v26, %v1715_v28  ;;  %v1952_v16 = vld [vmem:[%s2108_s3 + $0x8] sm:$0xff] }
  0x62   :  { %804 = vmatpush.bf16.msra.mxu3 %v1589_v40  ;;  %v338_v38 = vperm.slane %v1372_v22, 0 }
  0x63   :  { %766 = vmatpush.bf16.msra.mxu0 %v1513_v32  ;;  %v1667_v32 = vld [vmem:[#allocation3 + $0x348] sm:$0xf0] }
  0x64   :  { %v1670_v39 = vor.u32 %v1927_v31, %v1667_v32  ;;  %v1920_v31 = vld [vmem:[#allocation3 + $0x304] sm:$0xf0]  ;;  %v1919_v32 = vld [vmem:[#allocation3 + $0x304] sm:$0xf] }
  0x65   :  { %792 = vmatpush.bf16.msra.mxu2 %v1517_v34  ;;  %v1634_v33 = vor.u32 %v1920_v31, %v1633_v30 }
  0x67   :  { %767 = vmatpush.bf16.msra.mxu0 %v1505_v44  ;;  %v339_v44 = vperm.slane %v1372_v22, 1  ;;  %v1643_v22 = vld [vmem:[#allocation3 + $0x318] sm:$0xf0] }
  0x69   :  { %793 = vmatpush.bf16.msra.mxu2 %v1509_v46 }
  0xa7   :  { %v253_v50 = vpop.f32.mrf.mxu0 }
  0xa8   :  { %v254_v51 = vadd.f32 %v253_v50, %v73_v47  ;;  %v266_v52 = vpop.f32.mrf.mxu1  ;;  %v1576_v47 = vld [vmem:[#allocation3 + $0x290] sm:$0xf] }
  0xa9   :  { %v1577_v50 = vor.u32 %v1906_v48, %v1576_v47 }
  0xaa   :  { %v267_v53 = vadd.f32 %v266_v52, %v254_v51  ;;  %v1578_v51 = vld [vmem:[#allocation3 + $0x298] sm:$0xf0] }
  0xab   :  { %v1581_v52 = vor.u32 %v1905_v49, %v1578_v51  ;;  %779 = vmatpush.bf16.msra.mxu1 %v1577_v50 }
  0xac   :  { %v296_v55 = vmul.f32 0.2, %v267_v53 }
  0xad   :  { %805 = vmatpush.bf16.msra.mxu3 %v1581_v52 }
  0xae   :  { %v298_v56 = vmax.f32 %v267_v53, %v296_v55  ;;  %v1568_v53 = vld [vmem:[#allocation3 + $0x280] sm:$0xf]  ;;  %v1903_v55 = vld [vmem:[#allocation3 + $0x284] sm:$0xf] }
  0xaf   :  { %v279_v57 = vpop.f32.mrf.mxu2  ;;  %v255_v60 = vpop.f32.mrf.mxu0 }
  0xb0   :  { %v280_v58 = vadd.f32 %v279_v57, %v74_v54  ;;  %v292_v59 = vpop.f32.mrf.mxu3  ;;  %v300_v61 = vpack.c.bf16 %v298_v56, %v298_v56  ;;  %v268_v62 = vpop.f32.mrf.mxu1  ;;  %v1904_v54 = vld [vmem:[#allocation3 + $0x284] sm:$0xf0]  ;;  %v1570_v57 = vld [vmem:[#allocation3 + $0x288] sm:$0xf0]  ;;  %v1934_v60 = vld [vmem:[#allocation3 + $0x374] sm:$0xf0] }
  0xb1   :  { %v1569_v56 = vor.u32 %v1904_v54, %v1568_v53 }
  0xb2   :  { %v293_v63 = vadd.f32 %v292_v59, %v280_v58  ;;  %510 = vmatmul.bf16.vlgmr.msrb.gmra.mxu0 %v300_v61  ;;  %536 = vmatmul.bf16.vlgmr.msrb.gmra.mxu2 %v300_v61  ;;  %v1573_v58 = vor.u32 %v1903_v55, %v1570_v57  ;;  %v1689_v59 = vld [vmem:[#allocation3 + $0x370] sm:$0xf]  ;;  %v1933_v61 = vld [vmem:[#allocation3 + $0x374] sm:$0xf] }
  0xb3   :  { %780 = vmatpush.bf16.msra.mxu1 %v1569_v56  ;;  %v1690_v62 = vor.u32 %v1934_v60, %v1689_v59  ;;  %v1926_v59 = vld [vmem:[#allocation3 + $0x334] sm:$0xf0]  ;;  %v1925_v60 = vld [vmem:[#allocation3 + $0x334] sm:$0xf] }
  0xb4   :  { %v297_v0 = vmul.f32 0.2, %v293_v63  ;;  %806 = vmatpush.bf16.msra.mxu3 %v1573_v58  ;;  %v1657_v58 = vld [vmem:[#allocation3 + $0x330] sm:$0xf] }
  0xb5   :  { %1018 = vmatpush.bf16.msrb.mxu0 %v1690_v62  ;;  %v1659_v62 = vld [vmem:[#allocation3 + $0x338] sm:$0xf0] }
  0xb6   :  { %v299_v1 = vmax.f32 %v293_v63, %v297_v0  ;;  %v1691_v63 = vld [vmem:[#allocation3 + $0x378] sm:$0xf0]  ;;  %v1681_v0 = vld [vmem:[#allocation3 + $0x360] sm:$0xf] }
  0xb7   :  { %v281_v2 = vpop.f32.mrf.mxu2 }
  0xb8   :  { %v301_v3 = vpack.c.bf16 %v299_v1, %v299_v1  ;;  %v294_v4 = vpop.f32.mrf.mxu3  ;;  %v1932_v1 = vld [vmem:[#allocation3 + $0x364] sm:$0xf0]  ;;  %v1694_v2 = vor.u32 %v1933_v61, %v1691_v63  ;;  %v1658_v61 = vor.u32 %v1926_v59, %v1657_v58  ;;  %v1662_v63 = vor.u32 %v1925_v60, %v1659_v62 }
  0xb9   :  { %v1683_v4 = vld [vmem:[#allocation3 + $0x368] sm:$0xf0]  ;;  %v1682_v6 = vor.u32 %v1932_v1, %v1681_v0  ;;  %v1729_v0 = vld [vmem:[#allocation3 + $0x3c0] sm:$0xf]  ;;  %v1944_v1 = vld [vmem:[#allocation3 + $0x3c4] sm:$0xf0] }
  0xba   :  { %523 = vmatmul.bf16.vlgmr.msrb.gmra.mxu1 %v301_v3  ;;  %549 = vmatmul.bf16.vlgmr.msrb.gmra.mxu3 %v301_v3  ;;  %v1931_v3 = vld [vmem:[#allocation3 + $0x364] sm:$0xf] }
  0xbb   :  { %1044 = vmatpush.bf16.msrb.mxu2 %v1694_v2  ;;  %v1686_v10 = vor.u32 %v1931_v3, %v1683_v4  ;;  %1031 = vmatpush.bf16.msrb.mxu1 %v1754_v11  ;;  %v1943_v2 = vld [vmem:[#allocation3 + $0x3c4] sm:$0xf]  ;;  %v1730_v3 = vor.u32 %v1944_v1, %v1729_v0  ;;  %v1731_v4 = vld [vmem:[#allocation3 + $0x3c8] sm:$0xf0] }
  0xbc   :  { %1057 = vmatpush.bf16.msrb.mxu3 %v1758_v12  ;;  %1019 = vmatpush.bf16.msrb.mxu0 %v1682_v6  ;;  %v1924_v6 = vld [vmem:[#allocation3 + $0x324] sm:$0xf0]  ;;  %v1734_v7 = vor.u32 %v1943_v2, %v1731_v4  ;;  %v1721_v12 = vld [vmem:[#allocation3 + $0x3b0] sm:$0xf] }
  0xbd   :  { %v1650_v8 = vor.u32 %v1924_v6, %v1649_v5  ;;  %v1722_v15 = vor.u32 %v1942_v13, %v1721_v12  ;;  %v1954_v12 = vld [vmem:[%s2108_s3 + $0x18] sm:$0xff]  ;;  %v1963_v13 = vld [vmem:[%s2108_s3 + $0x60] sm:$0xff] }
  0xbf   :  { %1045 = vmatpush.bf16.msrb.mxu2 %v1686_v10  ;;  %1032 = vmatpush.bf16.msrb.mxu1 %v1746_v19  ;;  %v1651_v10 = vld [vmem:[#allocation3 + $0x328] sm:$0xf0]  ;;  %v1922_v19 = vld [vmem:[#allocation3 + $0x314] sm:$0xf0] }
  0xc0   :  { %1058 = vmatpush.bf16.msrb.mxu3 %v1750_v24  ;;  %1020 = vmatpush.bf16.msrb.mxu0 %v1674_v23  ;;  %v1654_v11 = vor.u32 %v1923_v9, %v1651_v10  ;;  %v1642_v20 = vor.u32 %v1922_v19, %v1641_v18  ;;  %v1646_v23 = vor.u32 %v1921_v21, %v1643_v22  ;;  %v1713_v24 = vld [vmem:[#allocation3 + $0x3a0] sm:$0xf]  ;;  %v1960_v19 = vld [vmem:[%s2108_s3 + $0x48] sm:$0xff]  ;;  %v1972_v21 = vld [vmem:[#allocation2] ss:$0 sm:$0xff]  ;;  %v2002_v22 = vmov 0  }
  0xc1   :  { %v1951_v18 = vld [vmem:[%s2108_s3] sm:$0xff]  ;;  %1971 = vset.pattern.permute.xlu0 %v2002_v22 }
  0xc2   :  { %1112 = vperm.xlu0 %1971, %v1972_v21  }
  0xc3   :  { %1046 = vmatpush.bf16.msrb.mxu2 %v1678_v27  ;;  %1033 = vmatpush.bf16.msrb.mxu1 %v1738_v35  ;;  %v1714_v27 = vor.u32 %v1940_v25, %v1713_v24 }
  0xc4   :  { %1059 = vmatpush.bf16.msrb.mxu3 %v1742_v36  ;;  %1021 = vmatpush.bf16.msrb.mxu0 %v1666_v37  ;;  %v1705_v36 = vld [vmem:[#allocation3 + $0x390] sm:$0xf]  ;;  %v1938_v37 = vld [vmem:[#allocation3 + $0x394] sm:$0xf0] }
  0xc7   :  { %1047 = vmatpush.bf16.msrb.mxu2 %v1670_v39  ;;  %1034 = vmatpush.bf16.msrb.mxu1 %v1730_v3  ;;  %v1706_v39 = vor.u32 %v1938_v37, %v1705_v36 }
  0xc8   :  { %1022 = vmatpush.bf16.msrb.mxu0 %v1658_v61  ;;  %1060 = vmatpush.bf16.msrb.mxu3 %v1734_v7 }
  0xcb   :  { %1048 = vmatpush.bf16.msrb.mxu2 %v1662_v63  ;;  %1035 = vmatpush.bf16.msrb.mxu1 %v1722_v15  ;;  %v1962_v15 = vld [vmem:[%s2108_s3 + $0x58] sm:$0xff] }
  0xcc   :  { %1023 = vmatpush.bf16.msrb.mxu0 %v1650_v8  ;;  %1061 = vmatpush.bf16.msrb.mxu3 %v1726_v17  ;;  %v1961_v17 = vld [vmem:[%s2108_s3 + $0x50] sm:$0xff] }
  0xcf   :  { %1049 = vmatpush.bf16.msrb.mxu2 %v1654_v11  ;;  %1036 = vmatpush.bf16.msrb.mxu1 %v1714_v27 }
  0xd0   :  { %1024 = vmatpush.bf16.msrb.mxu0 %v1642_v20  ;;  %1062 = vmatpush.bf16.msrb.mxu3 %v1718_v29  ;;  %v1959_v20 = vld [vmem:[%s2108_s3 + $0x40] sm:$0xff] }
  0xd3   :  { %1050 = vmatpush.bf16.msrb.mxu2 %v1646_v23  ;;  %1037 = vmatpush.bf16.msrb.mxu1 %v1706_v39  ;;  %v1630_v23 = vld [vmem:[%s2107_s2 + $0x6] sm:$0x3] }
  0xd4   :  { %1025 = vmatpush.bf16.msrb.mxu0 %v1634_v33  ;;  %v854_v25 = vperm.slane %v1630_v23, 0  ;;  %v855_v30 = vperm.slane %v1630_v23, 1 }
 0x12f   :  { %v511_v34 = vpop.f32.mrf.mxu0 }
 0x130   :  { %v512_v40 = vadd.f32 %v511_v34, %v338_v38  ;;  %v1635_v34 = vld [vmem:[#allocation3 + $0x308] sm:$0xf0]  ;;  %v1937_v38 = vld [vmem:[#allocation3 + $0x394] sm:$0xf] }
 0x131   :  { %v1638_v35 = vor.u32 %v1919_v32, %v1635_v34 }
 0x133   :  { %1051 = vmatpush.bf16.msrb.mxu2 %v1638_v35 }
 0x135   :  { %v537_v41 = vpop.f32.mrf.mxu2 }
 0x136   :  { %v538_v48 = vadd.f32 %v537_v41, %v339_v44  ;;  %v1935_v44 = vld [vmem:[#allocation3 + $0x384] sm:$0xf] }
 0x137   :  { %v524_v42 = vpop.f32.mrf.mxu1  ;;  %v513_v45 = vpop.f32.mrf.mxu0 }
 0x138   :  { %v525_v43 = vadd.f32 %v524_v42, %v512_v40  ;;  %v1707_v40 = vld [vmem:[#allocation3 + $0x398] sm:$0xf0]  ;;  %v1697_v42 = vld [vmem:[#allocation3 + $0x380] sm:$0xf] }
 0x139   :  { %v1710_v41 = vor.u32 %v1937_v38, %v1707_v40 }
 0x13a   :  { %v554_v46 = vmul.f32 0.2, %v525_v43 }
 0x13b   :  { %1063 = vmatpush.bf16.msrb.mxu3 %v1710_v41 }
 0x13c   :  { %v556_v47 = vmax.f32 %v525_v43, %v554_v46  ;;  %v1936_v43 = vld [vmem:[#allocation3 + $0x384] sm:$0xf0]  ;;  %v1699_v46 = vld [vmem:[#allocation3 + $0x388] sm:$0xf0] }
 0x13d   :  { %v550_v49 = vpop.f32.mrf.mxu3  ;;  %v539_v52 = vpop.f32.mrf.mxu2  ;;  %v1698_v45 = vor.u32 %v1936_v43, %v1697_v42 }
 0x13e   :  { %v558_v50 = vpack.c.bf16 %v556_v47, %v556_v47  ;;  %v551_v51 = vadd.f32 %v550_v49, %v538_v48  ;;  %v1702_v47 = vor.u32 %v1935_v44, %v1699_v46  ;;  %v1958_v48 = vld [vmem:[%s2108_s3 + $0x38] sm:$0xff]  ;;  %v1956_v52 = vld [vmem:[%s2108_s3 + $0x28] sm:$0xff] }
 0x13f   :  { %v526_v53 = vpop.f32.mrf.mxu1  ;;  %1038 = vmatpush.bf16.msrb.mxu1 %v1698_v45  ;;  %v1966_v49 = vld [vmem:[%s2108_s3 + $0x78] sm:$0xff]  ;;  %v1113_v45 = vpop.permute.xlu0 %1112 }
 0x140   :  { %v555_v54 = vmul.f32 0.2, %v551_v51  ;;  %768 = vmatmul.bf16.vlgmr.msra.gmra.mxu0 %v558_v50  ;;  %794 = vmatmul.bf16.vlgmr.msra.gmra.mxu2 %v558_v50  ;;  %v1957_v50 = vld [vmem:[%s2108_s3 + $0x30] sm:$0xff]  ;;  %v1964_v53 = vld [vmem:[%s2108_s3 + $0x68] sm:$0xff] }
 0x141   :  { %1064 = vmatpush.bf16.msrb.mxu3 %v1702_v47  ;;  %1211 = vmatpush.bf16.msra.mxu0 %v1958_v48 }
 0x142   :  { %v557_v55 = vmax.f32 %v551_v51, %v555_v54  ;;  %v1965_v51 = vld [vmem:[%s2108_s3 + $0x70] sm:$0xff]  ;;  %v1501_v54 = vld [vmem:[%s2107_s2 + $0x4] sm:$0x3] }
 0x143   :  { %v597_v62 = vperm.slane %v1501_v54, 1 }
 0x144   :  { %v559_v56 = vpack.c.bf16 %v557_v55, %v557_v55  ;;  %v1955_v55 = vld [vmem:[%s2108_s3 + $0x20] sm:$0xff] }
 0x145   :  { %v552_v57 = vpop.f32.mrf.mxu3  ;;  %1212 = vmatpush.bf16.msra.mxu0 %v1957_v50 }
 0x146   :  { %781 = vmatmul.bf16.vlgmr.msra.gmra.mxu1 %v559_v56  ;;  %807 = vmatmul.bf16.vlgmr.msra.gmra.mxu3 %v559_v56  ;;  %v596_v57 = vperm.slane %v1501_v54, 0 }
 0x147   :  { %1224 = vmatpush.bf16.msra.mxu1 %v1966_v49 }
 0x149   :  { %1213 = vmatpush.bf16.msra.mxu0 %v1956_v52 }
 0x14b   :  { %1225 = vmatpush.bf16.msra.mxu1 %v1965_v51 }
 0x14d   :  { %1214 = vmatpush.bf16.msra.mxu0 %v1955_v55 }
 0x14f   :  { %1226 = vmatpush.bf16.msra.mxu1 %v1964_v53 }
 0x151   :  { %1215 = vmatpush.bf16.msra.mxu0 %v1954_v12 }
 0x153   :  { %1227 = vmatpush.bf16.msra.mxu1 %v1963_v13 }
 0x155   :  { %1216 = vmatpush.bf16.msra.mxu0 %v1953_v14 }
 0x157   :  { %1228 = vmatpush.bf16.msra.mxu1 %v1962_v15 }
 0x159   :  { %1217 = vmatpush.bf16.msra.mxu0 %v1952_v16 }
 0x15b   :  { %1229 = vmatpush.bf16.msra.mxu1 %v1961_v17 }
 0x15d   :  { %1218 = vmatpush.bf16.msra.mxu0 %v1951_v18 }
 0x15f   :  { %1230 = vmatpush.bf16.msra.mxu1 %v1960_v19 }
 0x163   :  { %1231 = vmatpush.bf16.msra.mxu1 %v1959_v20 }
 0x1bd   :  { %v769_v56 = vpop.f32.mrf.mxu0 }
 0x1be   :  { %v770_v58 = vadd.f32 %v769_v56, %v596_v57 }
 0x1c3   :  { %v782_v59 = vpop.f32.mrf.mxu1  ;;  %v795_v60 = vpop.f32.mrf.mxu2 }
 0x1c4   :  { %v783_v61 = vadd.f32 %v782_v59, %v770_v58  ;;  %v796_v2 = vadd.f32 %v795_v60, %v597_v62 }
 0x1c5   :  { %v771_v63 = vpop.f32.mrf.mxu0 }
 0x1c6   :  { %v812_v0 = vmul.f32 0.2, %v783_v61 }
 0x1c8   :  { %v814_v1 = vmax.f32 %v783_v61, %v812_v0 }
 0x1c9   :  { %v808_v3 = vpop.f32.mrf.mxu3 }
 0x1ca   :  { %v816_v4 = vpack.c.bf16 %v814_v1, %v814_v1  ;;  %v809_v5 = vadd.f32 %v808_v3, %v796_v2 }
 0x1cb   :  { %v784_v6 = vpop.f32.mrf.mxu1  ;;  %v797_v7 = vpop.f32.mrf.mxu2 }
 0x1cc   :  { %v813_v8 = vmul.f32 0.2, %v809_v5  ;;  %1026 = vmatmul.bf16.vlgmr.msrb.gmra.mxu0 %v816_v4  ;;  %1052 = vmatmul.bf16.vlgmr.msrb.gmra.mxu2 %v816_v4 }
 0x1ce   :  { %v815_v9 = vmax.f32 %v809_v5, %v813_v8 }
 0x1d0   :  { %v817_v10 = vpack.c.bf16 %v815_v9, %v815_v9 }
 0x1d1   :  { %v810_v11 = vpop.f32.mrf.mxu3 }
 0x1d2   :  { %1039 = vmatmul.bf16.vlgmr.msrb.gmra.mxu1 %v817_v10  ;;  %1065 = vmatmul.bf16.vlgmr.msrb.gmra.mxu3 %v817_v10 }
 0x249   :  { %v1027_v24 = vpop.f32.mrf.mxu0 }
 0x24a   :  { %v1028_v26 = vadd.f32 %v1027_v24, %v854_v25 }
 0x24f   :  { %v1040_v27 = vpop.f32.mrf.mxu1  ;;  %v1053_v28 = vpop.f32.mrf.mxu2 }
 0x250   :  { %v1041_v29 = vadd.f32 %v1040_v27, %v1028_v26  ;;  %v1054_v34 = vadd.f32 %v1053_v28, %v855_v30 }
 0x251   :  { %v1029_v31 = vpop.f32.mrf.mxu0 }
 0x252   :  { %v1070_v32 = vmul.f32 0.2, %v1041_v29 }
 0x254   :  { %v1072_v33 = vmax.f32 %v1041_v29, %v1070_v32 }
 0x255   :  { %v1066_v35 = vpop.f32.mrf.mxu3 }
 0x256   :  { %v1074_v36 = vpack.c.bf16 %v1072_v33, %v1072_v33  ;;  %v1067_v37 = vadd.f32 %v1066_v35, %v1054_v34 }
 0x257   :  { %v1042_v38 = vpop.f32.mrf.mxu1  ;;  %v1055_v39 = vpop.f32.mrf.mxu2 }
 0x258   :  { %v1071_v40 = vmul.f32 0.2, %v1067_v37  ;;  %1219 = vmatmul.bf16.vlgmr.msra.gmra.mxu0 %v1074_v36 }
 0x25a   :  { %v1073_v41 = vmax.f32 %v1067_v37, %v1071_v40 }
 0x25c   :  { %v1075_v42 = vpack.c.bf16 %v1073_v41, %v1073_v41 }
 0x25d   :  { %v1068_v43 = vpop.f32.mrf.mxu3 }
 0x25e   :  { %1232 = vmatmul.bf16.vlgmr.msra.gmra.mxu1 %v1075_v42 }
 0x2d5   :  { %v1220_v44 = vpop.f32.mrf.mxu0 }
 0x2d6   :  { %v1221_v46 = vadd.f32 %v1220_v44, %v1113_v45 }
 0x2db   :  { %v1233_v47 = vpop.f32.mrf.mxu1 }
 0x2dc   :  { %v1234_v48 = vadd.f32 %v1233_v47, %v1221_v46 }
 0x2dd   :  { %v1222_v49 = vpop.f32.mrf.mxu0 }
 0x2de   :  { %1238 = vst.msk [vmem:[%s2110_s5] sm:$0xff] %vm1237_vm0, %v1234_v48 }
 0x2e3   :  { %v1235_v50 = vpop.f32.mrf.mxu1 }
 0x2e4   :  { %1243 = vsyncpa [#allocation4], 1 }

</bundles_post_ra>
